<compile_context>
chip_gen: v6e
topology: v6e:2x2x1
jax: 0.10.0
libtpu: 0.0.40
codegen_flags: <defaults>
</compile_context>

<pallas_src>
import functools

import jax
import jax.numpy as jnp
from jax import lax
from jax.experimental import pallas as pl
from jax.experimental.pallas import tpu as pltpu

_LANES = 128
_SUBLANE_PAD = 16   # safe granule for both f32 (8-row) and bf16 (16-row) tiles


def _round_up(x, m):
    return (x + m - 1) // m * m


def _vmem_capacity_bytes():
    try:
        return int(pltpu.get_tpu_info().vmem_capacity_bytes)
    except Exception:
        return 64 << 20   # conservative: v7x per-TensorCore VMEM


def _choose_batch_tiling(batch, sublane):
    """Return (batch_tile, padded_batch)."""
    if batch <= 256:
        # Small batch: single tile, grid=(1,).  Weight DMA dominates; a second
        # core would only re-fetch the resident weights.
        tb = _round_up(batch, sublane)
        return tb, tb
    # Larger batch: cap the tile at 512 rows but guarantee >= 2 grid steps so
    # the "parallel" axis can shard across TensorCores (v7x megacore).
    tb = min(512, _round_up(pl.cdiv(batch, 2), sublane))
    return tb, _round_up(batch, tb)


# --------------------------------------------------------------------------
# Kernels
# --------------------------------------------------------------------------

def _linear_relu(h, w, b, cdtype):
    y = jnp.dot(h, w, preferred_element_type=jnp.float32)   # f32 MXU accumulate
    y = jnp.maximum(y + b.astype(jnp.float32), 0.0)          # f32 epilogue
    return y.astype(cdtype)


def _head_epilogue(h, wout_ref, bout_ref, o_ref):
    # col 0 = critic value (no activation); cols >= 1 = actor logits (tanh).
    # Padded columns stay exactly zero (tanh(0) = 0) and are sliced off later.
    y = jnp.dot(h, wout_ref[...], preferred_element_type=jnp.float32)
    y = y + bout_ref[...].astype(jnp.float32)
    col = lax.broadcasted_iota(jnp.int32, y.shape, dimension=1)
    y = jnp.where(col == 0, y, jnp.tanh(y))
    o_ref[...] = y.astype(o_ref.dtype)


def _fused_kernel(num_hidden_layers, has_hidden, *args):
    """Resident-weight path: all weights live in VMEM for the whole call."""
    if has_hidden:
        x_ref, w0_ref, b0_ref, wh_ref, bh_ref, wout_ref, bout_ref, o_ref = args
    else:
        x_ref, w0_ref, b0_ref, wout_ref, bout_ref, o_ref = args
        wh_ref = bh_ref = None
    cdtype = w0_ref.dtype

    # Cast x in-register (wrapper keeps x at its HBM dtype; no extra XLA pass).
    h = _linear_relu(x_ref[...].astype(cdtype), w0_ref[...], b0_ref[...], cdtype)

    if has_hidden:
        if num_hidden_layers <= 8:
            # Static unroll: full LLO scheduler visibility.
            for l in range(num_hidden_layers):
                h = _linear_relu(h, wh_ref[l], bh_ref[l], cdtype)
        else:
            # Very deep stacks: bound code size / vreg live ranges.
            h = lax.fori_loop(
                0, num_hidden_layers,
                lambda l, hh: _linear_relu(hh, wh_ref[l], bh_ref[l], cdtype),
                h, unroll=False)

    _head_epilogue(h, wout_ref, bout_ref, o_ref)


def _fused_stream_kernel(num_hidden_layers,
                         x_ref, w0_ref, b0_ref, wh_hbm, bh_hbm,
                         wout_ref, bout_ref, o_ref,
                         wbuf, bbuf, sem):
    """Streaming path: wh/bh stay in HBM; one layer is DMA'd at a time into a
    2-slot VMEM scratch, overlapping layer l+1's weight DMA with layer l's
    matmul."""
    cdtype = w0_ref.dtype
    L = num_hidden_layers

    def start_fetch(l, slot):
        pltpu.make_async_copy(wh_hbm.at[l], wbuf.at[slot], sem.at[0, slot]).start()
        pltpu.make_async_copy(bh_hbm.at[l], bbuf.at[slot], sem.at[1, slot]).start()

    def wait_fetch(slot):
        pltpu.make_async_copy(wh_hbm.at[0], wbuf.at[slot], sem.at[0, slot]).wait()
        pltpu.make_async_copy(bh_hbm.at[0], bbuf.at[slot], sem.at[1, slot]).wait()

    # Prime layer 0 into slot 0; its DMA overlaps the first (input) layer.
    start_fetch(0, 0)
    h = _linear_relu(x_ref[...].astype(cdtype), w0_ref[...], b0_ref[...], cdtype)

    def body(l, h):
        slot = l & 1
        wait_fetch(slot)

        @pl.when(l + 1 < L)
        def _():
            start_fetch(l + 1, 1 - slot)

        return _linear_relu(h, wbuf[slot], bbuf[slot], cdtype)

    h = lax.fori_loop(0, L, body, h, unroll=False)

    _head_epilogue(h, wout_ref, bout_ref, o_ref)


# --------------------------------------------------------------------------
# Wrapper
# --------------------------------------------------------------------------

def actor_critic_forward(params, x, *, output_shape, layers,
                         out_dtype=None, force_stream=False):
    """Equivalent of ActorCritic.forward(x): returns (values, logits)."""
    w0, b0 = params["w0"], params["b0"]
    w_head, b_head = params["w_head"], params["b_head"]
    wh, bh = params["wh"], params["bh"]
    has_hidden = layers > 0

    batch, d_in = x.shape
    d_in_pad, hp = w0.shape
    out_pad = w_head.shape[1]
    cdtype = w0.dtype
    is_bf16 = cdtype == jnp.bfloat16

    # Pad the input feature dim with zero columns (matches zero-padded weight
    # rows at init -> exact).
    if d_in_pad != d_in:
        x = jnp.pad(x, ((0, 0), (0, d_in_pad - d_in)))

    sublane = 16 if is_bf16 else 8
    tb, padded_batch = _choose_batch_tiling(batch, sublane)
    if padded_batch != batch:
        x = jnp.pad(x, ((0, padded_batch - batch), (0, 0)))
    grid = (padded_batch // tb,)

    if out_dtype is None:
        # At very large batch the f32 output slab writeback can rival the
        # weight DMA; bf16 halves it while staying lane-dense.
        out_dtype = jnp.bfloat16 if padded_batch >= 8192 else jnp.float32
    out_itemsize = jnp.dtype(out_dtype).itemsize

    # ---- VMEM budgeting --------------------------------------------------
    head_bytes = w0.nbytes + b0.nbytes + w_head.nbytes + b_head.nbytes
    hidden_bytes = (wh.nbytes + bh.nbytes) if has_hidden else 0
    act_bytes = (2 * tb * hp * cdtype.itemsize     # two live activations
                 + tb * hp * 4                     # f32 trunk matmul acc
                 + tb * out_pad * 4)               # f32 head matmul acc
    io_bytes = 2 * tb * d_in_pad * x.dtype.itemsize + 2 * tb * out_pad * out_itemsize
    headroom = 2 << 20

    def resident_vmem(single_buffer):
        mult = 1 if single_buffer else 2
        return mult * (head_bytes + hidden_bytes) + act_bytes + io_bytes + headroom

    def stream_vmem(single_buffer):
        mult = 1 if single_buffer else 2
        stream_buf = 2 * (hp * hp + hp) * cdtype.itemsize
        return mult * head_bytes + stream_buf + act_bytes + io_bytes + headroom

    cap = max(_vmem_capacity_bytes() - (8 << 20), 24 << 20)
    use_stream = has_hidden and (force_stream or resident_vmem(True) > 0.75 * cap)
    # TODO(synk): if hp is so large that even a single (hp, hp) layer does not
    # fit VMEM, additionally tile each layer's matmul along its K/N dims.

    # ---- build + call ------------------------------------------------------
    def call(single_buffer):
        def resident_spec(shape):
            nd = len(shape)
            idx = lambda *args, _nd=nd: (0,) * _nd
            if single_buffer:
                try:
                    # Constant index_map -> double-buffering is pure VMEM waste.
                    return pl.BlockSpec(shape, idx, pipeline_mode=pl.Buffered(1))
                except TypeError:
                    pass
            return pl.BlockSpec(shape, idx)

        x_spec = pl.BlockSpec((tb, d_in_pad), lambda i: (i, 0))
        out_spec = pl.BlockSpec((tb, out_pad), lambda i: (i, 0))

        if use_stream:
            kernel = functools.partial(_fused_stream_kernel, layers)
            in_specs = [x_spec,
                        resident_spec(w0.shape), resident_spec(b0.shape),
                        pl.BlockSpec(memory_space=pl.ANY),   # wh stays in HBM
                        pl.BlockSpec(memory_space=pl.ANY),   # bh stays in HBM
                        resident_spec(w_head.shape), resident_spec(b_head.shape)]
            operands = [x, w0, b0, wh, bh, w_head, b_head]
            scratch = [pltpu.VMEM((2, hp, hp), cdtype),
                       pltpu.VMEM((2, 1, hp), cdtype),
                       pltpu.SemaphoreType.DMA((2, 2))]
            needed = stream_vmem(single_buffer)
        else:
            kernel = functools.partial(_fused_kernel, layers, has_hidden)
            in_specs = [x_spec, resident_spec(w0.shape), resident_spec(b0.shape)]
            operands = [x, w0, b0]
            if has_hidden:
                in_specs += [resident_spec(wh.shape), resident_spec(bh.shape)]
                operands += [wh, bh]
            in_specs += [resident_spec(w_head.shape), resident_spec(b_head.shape)]
            operands += [w_head, b_head]
            scratch = []
            needed = resident_vmem(single_buffer)

        flops = 2 * padded_batch * (d_in_pad * hp + layers * hp * hp + hp * out_pad)
        bytes_accessed = (x.nbytes + head_bytes + hidden_bytes
                          + padded_batch * out_pad * out_itemsize)
        cost = pl.CostEstimate(flops=int(flops),
                               transcendentals=int(padded_batch * out_pad),
                               bytes_accessed=int(bytes_accessed))

        vmem_limit = int(min(max(needed, 32 << 20), cap))

        return pl.pallas_call(
            kernel,
            out_shape=jax.ShapeDtypeStruct((padded_batch, out_pad), out_dtype),
            grid=grid,
            in_specs=in_specs,
            out_specs=out_spec,
            scratch_shapes=scratch,
            compiler_params=pltpu.CompilerParams(
                dimension_semantics=("parallel",),
                vmem_limit_bytes=vmem_limit),
            cost_estimate=cost,
        )(*operands)

    try:
        out = call(single_buffer=True)
    except Exception:
        # Robust fallback if single-buffered resident specs are rejected by
        # this JAX/Mosaic version: plain (double-buffered) specs.
        out = call(single_buffer=False)

    values = out[:batch, 0:1].astype(jnp.float32)
    logits = out[:batch, 1:1 + output_shape]
    return values, logits


# --------------------------------------------------------------------------
# Parameter init (mirrors nn.Linear default init; critic trunk == actor trunk
# at construction time because of deepcopy)
# --------------------------------------------------------------------------

def init_actor_critic_params(key, input_shape, output_shape, hidden_units,
                             layers, dtype=jnp.float32):
    # Hidden width: pad to 128 lanes only when already >= 128; for small RL
    # widths (e.g. 32) padding to 128 would inflate trunk bytes/flops ~16x.
    if hidden_units >= _LANES:
        hp = _round_up(hidden_units, _LANES)
    else:
        hp = _round_up(hidden_units, _SUBLANE_PAD)
    d_in_pad = _round_up(input_shape, _SUBLANE_PAD)
    out_pad = _round_up(1 + output_shape, _LANES)   # [critic | actor | 0-pad]

    def linear(key, fan_in, fan_out, pad_in, pad_out):
        kw, kb = jax.random.split(key)
        bound = 1.0 / jnp.sqrt(jnp.float32(fan_in))
        w = jax.random.uniform(kw, (fan_in, fan_out), jnp.float32, -bound, bound)
        b = jax.random.uniform(kb, (1, fan_out), jnp.float32, -bound, bound)
        w = jnp.zeros((pad_in, pad_out), jnp.float32).at[:fan_in, :fan_out].set(w)
        b = jnp.zeros((1, pad_out), jnp.float32).at[:, :fan_out].set(b)
        return w, b

    keys = jax.random.split(key, layers + 3)
    w0, b0 = linear(keys[0], input_shape, hidden_units, d_in_pad, hp)

    if layers > 0:
        whs, bhs = [], []
        for l in range(layers):
            w, b = linear(keys[1 + l], hidden_units, hidden_units, hp, hp)
            whs.append(w)
            bhs.append(b)
        wh, bh = jnp.stack(whs), jnp.stack(bhs)
    else:
        wh = jnp.zeros((0, hp, hp), jnp.float32)
        bh = jnp.zeros((0, 1, hp), jnp.float32)

    wc, bc = linear(keys[layers + 1], hidden_units, 1, hp, 1)
    wa, ba = linear(keys[layers + 2], hidden_units, output_shape, hp, output_shape)
    w_head = jnp.zeros((hp, out_pad), jnp.float32)
    w_head = w_head.at[:, 0:1].set(wc).at[:, 1:1 + output_shape].set(wa)
    b_head = jnp.zeros((1, out_pad), jnp.float32)
    b_head = b_head.at[:, 0:1].set(bc).at[:, 1:1 + output_shape].set(ba)

    params = dict(w0=w0, b0=b0, wh=wh, bh=bh, w_head=w_head, b_head=b_head)
    return {k: v.astype(dtype) for k, v in params.items()}


def _reference_forward(params, x, *, output_shape, layers):
    """Plain-JAX reference mirroring the PyTorch forward (shared trunk)."""
    p = {k: v.astype(jnp.float32) for k, v in params.items()}
    w0 = p["w0"][:x.shape[1]]                     # drop zero-padded input rows
    h = jnp.maximum(x.astype(jnp.float32) @ w0 + p["b0"], 0.0)
    for l in range(layers):
        h = jnp.maximum(h @ p["wh"][l] + p["bh"][l], 0.0)
    wc, bc = p["w_head"][:, 0:1], p["b_head"][:, 0:1]
    wa, ba = p["w_head"][:, 1:1 + output_shape], p["b_head"][:, 1:1 + output_shape]
    values = h @ wc + bc
    logits = jnp.tanh(h @ wa + ba)
    return values, logits


if __name__ == "__main__":
    batch = 8
    input_shape = 16
    output_shape = 4
    hidden_units = 32
    layers = 2

    key = jax.random.PRNGKey(0)
    kp, kx = jax.random.split(key)
    x = jax.random.normal(kx, (batch, input_shape), jnp.float32)

    # 1) float32 params, resident-weight path: strict check.
    params = init_actor_critic_params(kp, input_shape, output_shape,
                                      hidden_units, layers, dtype=jnp.float32)
    values, logits = actor_critic_forward(params, x, output_shape=output_shape,
                                          layers=layers)
    values, logits = jax.block_until_ready((values, logits))
    v_ref, l_ref = _reference_forward(params, x, output_shape=output_shape,
                                      layers=layers)
    assert values.shape == (batch, 1)
    assert logits.shape == (batch, output_shape)
    assert jnp.allclose(values, v_ref, atol=1e-5, rtol=1e-5)
    assert jnp.allclose(logits, l_ref, atol=1e-5, rtol=1e-5)

    # 2) Forced per-layer weight-STREAMING path + non-aligned batch (10 -> 16).
    x10 = jax.random.normal(jax.random.PRNGKey(1), (10, input_shape), jnp.float32)
    v_s, l_s = actor_critic_forward(params, x10, output_shape=output_shape,
                                    layers=layers, force_stream=True)
    v_s, l_s = jax.block_until_ready((v_s, l_s))
    v_sr, l_sr = _reference_forward(params, x10, output_shape=output_shape,
                                    layers=layers)
    assert v_s.shape == (10, 1) and l_s.shape == (10, output_shape)
    assert jnp.allclose(v_s, v_sr, atol=1e-5, rtol=1e-5)
    assert jnp.allclose(l_s, l_sr, atol=1e-5, rtol=1e-5)

    # 3) bfloat16 weight storage (f32 MXU accumulation + f32 epilogues):
    #    loose check against the reference run on the same bf16 params.
    params_bf16 = {k: v.astype(jnp.bfloat16) for k, v in params.items()}
    v16, l16 = actor_critic_forward(params_bf16, x, output_shape=output_shape,
                                    layers=layers)
    v16, l16 = jax.block_until_ready((v16, l16))
    v16_ref, l16_ref = _reference_forward(params_bf16, x,
                                          output_shape=output_shape,
                                          layers=layers)
    assert jnp.allclose(v16, v16_ref, atol=5e-2, rtol=5e-2)
    assert jnp.allclose(l16, l16_ref, atol=5e-2, rtol=5e-2)

    # 4) layers == 0: no dummy hidden stack shipped to the kernel.
    params0 = init_actor_critic_params(kp, input_shape, output_shape,
                                       hidden_units, 0, dtype=jnp.float32)
    v0, l0 = actor_critic_forward(params0, x, output_shape=output_shape, layers=0)
    v0, l0 = jax.block_until_ready((v0, l0))
    v0_ref, l0_ref = _reference_forward(params0, x, output_shape=output_shape,
                                        layers=0)
    assert jnp.allclose(v0, v0_ref, atol=1e-5, rtol=1e-5)
    assert jnp.allclose(l0, l0_ref, atol=1e-5, rtol=1e-5)

    print("KERNEL_OK")
</pallas_src>

<mosaic_0001>
module attributes {stable_mosaic.version = 11 : i64} {
  func.func @_fused_kernel(%arg0: i32, %arg1: memref<8x16xf32, #tpu.memory_space<vmem>>, %arg2: memref<16x32xf32, #tpu.memory_space<vmem>>, %arg3: memref<1x32xf32, #tpu.memory_space<vmem>>, %arg4: memref<2x32x32xf32, #tpu.memory_space<vmem>>, %arg5: memref<2x1x32xf32, #tpu.memory_space<vmem>>, %arg6: memref<32x128xf32, #tpu.memory_space<vmem>>, %arg7: memref<1x128xf32, #tpu.memory_space<vmem>>, %arg8: memref<8x128xf32, #tpu.memory_space<vmem>>) attributes {dimension_semantics = [#tpu.dimension_semantics<parallel>], iteration_bounds = array<i64: 1>, scalar_prefetch = 0 : i64, scratch_operands = 0 : i64, tpu.core_type = #tpu.core_type<tc>, window_params = [{transform_indices = @transform_0, window_bounds = array<i64: 8, 16>}, {pipeline_mode = #tpu.pipeline_mode<synchronous>, transform_indices = @transform_1, window_bounds = array<i64: 16, 32>}, {pipeline_mode = #tpu.pipeline_mode<synchronous>, transform_indices = @transform_2, window_bounds = array<i64: 1, 32>}, {pipeline_mode = #tpu.pipeline_mode<synchronous>, transform_indices = @transform_3, window_bounds = array<i64: 2, 32, 32>}, {pipeline_mode = #tpu.pipeline_mode<synchronous>, transform_indices = @transform_4, window_bounds = array<i64: 2, 1, 32>}, {pipeline_mode = #tpu.pipeline_mode<synchronous>, transform_indices = @transform_5, window_bounds = array<i64: 32, 128>}, {pipeline_mode = #tpu.pipeline_mode<synchronous>, transform_indices = @transform_6, window_bounds = array<i64: 1, 128>}, {transform_indices = @transform_7, window_bounds = array<i64: 8, 128>}]} {
    %c0 = arith.constant 0 : index
    %c0_0 = arith.constant 0 : index
    %0 = vector.load %arg1[%c0, %c0_0] : memref<8x16xf32, #tpu.memory_space<vmem>>, vector<8x16xf32>
    %c0_1 = arith.constant 0 : index
    %c0_2 = arith.constant 0 : index
    %1 = vector.load %arg2[%c0_1, %c0_2] : memref<16x32xf32, #tpu.memory_space<vmem>>, vector<16x32xf32>
    %c0_3 = arith.constant 0 : index
    %c0_4 = arith.constant 0 : index
    %2 = vector.load %arg3[%c0_3, %c0_4] : memref<1x32xf32, #tpu.memory_space<vmem>>, vector<1x32xf32>
    %cst = arith.constant dense<0.000000e+00> : vector<8x32xf32>
    %3 = tpu.matmul %0, %1, %cst {dimension_numbers = #tpu.dot_dimension_numbers<[1], [0], [0], [1], [0, 0, 1, 1], [], []>} : vector<8x16xf32>, vector<16x32xf32>, vector<8x32xf32> -> vector<8x32xf32>
    %4 = vector.broadcast %2 : vector<1x32xf32> to vector<8x32xf32>
    %5 = arith.addf %3, %4 : vector<8x32xf32>
    %cst_5 = arith.constant 0.000000e+00 : f32
    %6 = vector.broadcast %cst_5 : f32 to vector<8x32xf32>
    %7 = arith.maximumf %5, %6 : vector<8x32xf32>
    %c0_6 = arith.constant 0 : index
    %c0_7 = arith.constant 0 : index
    %c0_8 = arith.constant 0 : index
    %8 = vector.load %arg4[%c0_6, %c0_7, %c0_8] : memref<2x32x32xf32, #tpu.memory_space<vmem>>, vector<1x32x32xf32>
    %9 = vector.shape_cast %8 : vector<1x32x32xf32> to vector<32x32xf32>
    %c0_9 = arith.constant 0 : index
    %c0_10 = arith.constant 0 : index
    %c0_11 = arith.constant 0 : index
    %10 = vector.load %arg5[%c0_9, %c0_10, %c0_11] : memref<2x1x32xf32, #tpu.memory_space<vmem>>, vector<1x1x32xf32>
    %11 = vector.shape_cast %10 : vector<1x1x32xf32> to vector<1x32xf32>
    %cst_12 = arith.constant dense<0.000000e+00> : vector<8x32xf32>
    %12 = tpu.matmul %7, %9, %cst_12 {dimension_numbers = #tpu.dot_dimension_numbers<[1], [0], [0], [1], [0, 0, 1, 1], [], []>} : vector<8x32xf32>, vector<32x32xf32>, vector<8x32xf32> -> vector<8x32xf32>
    %13 = vector.broadcast %11 : vector<1x32xf32> to vector<8x32xf32>
    %14 = arith.addf %12, %13 : vector<8x32xf32>
    %cst_13 = arith.constant 0.000000e+00 : f32
    %15 = vector.broadcast %cst_13 : f32 to vector<8x32xf32>
    %16 = arith.maximumf %14, %15 : vector<8x32xf32>
    %c1 = arith.constant 1 : index
    %c0_14 = arith.constant 0 : index
    %c0_15 = arith.constant 0 : index
    %17 = vector.load %arg4[%c1, %c0_14, %c0_15] : memref<2x32x32xf32, #tpu.memory_space<vmem>>, vector<1x32x32xf32>
    %18 = vector.shape_cast %17 : vector<1x32x32xf32> to vector<32x32xf32>
    %c1_16 = arith.constant 1 : index
    %c0_17 = arith.constant 0 : index
    %c0_18 = arith.constant 0 : index
    %19 = vector.load %arg5[%c1_16, %c0_17, %c0_18] : memref<2x1x32xf32, #tpu.memory_space<vmem>>, vector<1x1x32xf32>
    %20 = vector.shape_cast %19 : vector<1x1x32xf32> to vector<1x32xf32>
    %cst_19 = arith.constant dense<0.000000e+00> : vector<8x32xf32>
    %21 = tpu.matmul %16, %18, %cst_19 {dimension_numbers = #tpu.dot_dimension_numbers<[1], [0], [0], [1], [0, 0, 1, 1], [], []>} : vector<8x32xf32>, vector<32x32xf32>, vector<8x32xf32> -> vector<8x32xf32>
    %22 = vector.broadcast %20 : vector<1x32xf32> to vector<8x32xf32>
    %23 = arith.addf %21, %22 : vector<8x32xf32>
    %cst_20 = arith.constant 0.000000e+00 : f32
    %24 = vector.broadcast %cst_20 : f32 to vector<8x32xf32>
    %25 = arith.maximumf %23, %24 : vector<8x32xf32>
    %c0_21 = arith.constant 0 : index
    %c0_22 = arith.constant 0 : index
    %26 = vector.load %arg6[%c0_21, %c0_22] : memref<32x128xf32, #tpu.memory_space<vmem>>, vector<32x128xf32>
    %cst_23 = arith.constant dense<0.000000e+00> : vector<8x128xf32>
    %27 = tpu.matmul %25, %26, %cst_23 {dimension_numbers = #tpu.dot_dimension_numbers<[1], [0], [0], [1], [0, 0, 1, 1], [], []>} : vector<8x32xf32>, vector<32x128xf32>, vector<8x128xf32> -> vector<8x128xf32>
    %c0_24 = arith.constant 0 : index
    %c0_25 = arith.constant 0 : index
    %28 = vector.load %arg7[%c0_24, %c0_25] : memref<1x128xf32, #tpu.memory_space<vmem>>, vector<1x128xf32>
    %29 = vector.broadcast %28 : vector<1x128xf32> to vector<8x128xf32>
    %30 = arith.addf %27, %29 : vector<8x128xf32>
    %31 = tpu.iota {dimensions = array<i32: 1>} : vector<8x128xi32>
    %c0_i32 = arith.constant 0 : i32
    %32 = vector.broadcast %c0_i32 : i32 to vector<8x128xi32>
    %33 = arith.cmpi eq, %31, %32 : vector<8x128xi32>
    %34 = math.tanh %30 : vector<8x128xf32>
    %35 = arith.select %33, %30, %34 : vector<8x128xi1>, vector<8x128xf32>
    %c0_26 = arith.constant 0 : index
    %c0_27 = arith.constant 0 : index
    %36 = vector.load %arg8[%c0_26, %c0_27] : memref<8x128xf32, #tpu.memory_space<vmem>>, vector<8x128xf32>
    tpu.vector_store %arg8[%c0_26, %c0_27], %35 {strides = array<i32>} : memref<8x128xf32, #tpu.memory_space<vmem>>, vector<8x128xf32>,
    return
  }
  func.func @transform_0(%arg0: i32) -> (i32, i32) {
    %c0_i32 = arith.constant 0 : i32
    %c0_i32_0 = arith.constant 0 : i32
    return %arg0, %c0_i32 : i32, i32
  }
  func.func @transform_1(%arg0: i32) -> (i32, i32) {
    %c0_i32 = arith.constant 0 : i32
    %c0_i32_0 = arith.constant 0 : i32
    %c0_i32_1 = arith.constant 0 : i32
    return %c0_i32, %c0_i32_0 : i32, i32
  }
  func.func @transform_2(%arg0: i32) -> (i32, i32) {
    %c0_i32 = arith.constant 0 : i32
    %c0_i32_0 = arith.constant 0 : i32
    %c0_i32_1 = arith.constant 0 : i32
    return %c0_i32, %c0_i32_0 : i32, i32
  }
  func.func @transform_3(%arg0: i32) -> (i32, i32, i32) {
    %c0_i32 = arith.constant 0 : i32
    %c0_i32_0 = arith.constant 0 : i32
    %c0_i32_1 = arith.constant 0 : i32
    %c0_i32_2 = arith.constant 0 : i32
    return %c0_i32, %c0_i32_0, %c0_i32_1 : i32, i32, i32
  }
  func.func @transform_4(%arg0: i32) -> (i32, i32, i32) {
    %c0_i32 = arith.constant 0 : i32
    %c0_i32_0 = arith.constant 0 : i32
    %c0_i32_1 = arith.constant 0 : i32
    %c0_i32_2 = arith.constant 0 : i32
    return %c0_i32, %c0_i32_0, %c0_i32_1 : i32, i32, i32
  }
  func.func @transform_5(%arg0: i32) -> (i32, i32) {
    %c0_i32 = arith.constant 0 : i32
    %c0_i32_0 = arith.constant 0 : i32
    %c0_i32_1 = arith.constant 0 : i32
    return %c0_i32, %c0_i32_0 : i32, i32
  }
  func.func @transform_6(%arg0: i32) -> (i32, i32) {
    %c0_i32 = arith.constant 0 : i32
    %c0_i32_0 = arith.constant 0 : i32
    %c0_i32_1 = arith.constant 0 : i32
    return %c0_i32, %c0_i32_0 : i32, i32
  }
  func.func @transform_7(%arg0: i32) -> (i32, i32) {
    %c0_i32 = arith.constant 0 : i32
    %c0_i32_0 = arith.constant 0 : i32
    return %arg0, %c0_i32 : i32, i32
  }
}

module attributes {stable_mosaic.version = 11 : i64} {
  func.func @_fused_kernel(%arg0: i32, %arg1: memref<8x16xf32, #tpu.memory_space<vmem>>, %arg2: memref<16x32xf32, #tpu.memory_space<vmem>>, %arg3: memref<1x32xf32, #tpu.memory_space<vmem>>, %arg4: memref<2x32x32xf32, #tpu.memory_space<vmem>>, %arg5: memref<2x1x32xf32, #tpu.memory_space<vmem>>, %arg6: memref<32x128xf32, #tpu.memory_space<vmem>>, %arg7: memref<1x128xf32, #tpu.memory_space<vmem>>, %arg8: memref<8x128xf32, #tpu.memory_space<vmem>>) attributes {dimension_semantics = [#tpu.dimension_semantics<parallel>], iteration_bounds = array<i64: 1>, scalar_prefetch = 0 : i64, scratch_operands = 0 : i64, tpu.core_type = #tpu.core_type<tc>, window_params = [{transform_indices = @transform_0, window_bounds = array<i64: 8, 16>}, {pipeline_mode = #tpu.pipeline_mode<synchronous>, transform_indices = @transform_1, window_bounds = array<i64: 16, 32>}, {pipeline_mode = #tpu.pipeline_mode<synchronous>, transform_indices = @transform_2, window_bounds = array<i64: 1, 32>}, {pipeline_mode = #tpu.pipeline_mode<synchronous>, transform_indices = @transform_3, window_bounds = array<i64: 2, 32, 32>}, {pipeline_mode = #tpu.pipeline_mode<synchronous>, transform_indices = @transform_4, window_bounds = array<i64: 2, 1, 32>}, {pipeline_mode = #tpu.pipeline_mode<synchronous>, transform_indices = @transform_5, window_bounds = array<i64: 32, 128>}, {pipeline_mode = #tpu.pipeline_mode<synchronous>, transform_indices = @transform_6, window_bounds = array<i64: 1, 128>}, {transform_indices = @transform_7, window_bounds = array<i64: 8, 128>}]} {
    %c0 = arith.constant 0 : index
    %c0_0 = arith.constant 0 : index
    %0 = vector.load %arg1[%c0, %c0_0] : memref<8x16xf32, #tpu.memory_space<vmem>>, vector<8x16xf32>
    %c0_1 = arith.constant 0 : index
    %c0_2 = arith.constant 0 : index
    %1 = vector.load %arg2[%c0_1, %c0_2] : memref<16x32xf32, #tpu.memory_space<vmem>>, vector<16x32xf32>
    %c0_3 = arith.constant 0 : index
    %c0_4 = arith.constant 0 : index
    %2 = vector.load %arg3[%c0_3, %c0_4] : memref<1x32xf32, #tpu.memory_space<vmem>>, vector<1x32xf32>
    %cst = arith.constant dense<0.000000e+00> : vector<8x32xf32>
    %3 = tpu.matmul %0, %1, %cst {dimension_numbers = #tpu.dot_dimension_numbers<[1], [0], [0], [1], [0, 0, 1, 1], [], []>} : vector<8x16xf32>, vector<16x32xf32>, vector<8x32xf32> -> vector<8x32xf32>
    %4 = vector.broadcast %2 : vector<1x32xf32> to vector<8x32xf32>
    %5 = arith.addf %3, %4 : vector<8x32xf32>
    %cst_5 = arith.constant 0.000000e+00 : f32
    %6 = vector.broadcast %cst_5 : f32 to vector<8x32xf32>
    %7 = arith.maximumf %5, %6 : vector<8x32xf32>
    %c0_6 = arith.constant 0 : index
    %c0_7 = arith.constant 0 : index
    %c0_8 = arith.constant 0 : index
    %8 = vector.load %arg4[%c0_6, %c0_7, %c0_8] : memref<2x32x32xf32, #tpu.memory_space<vmem>>, vector<1x32x32xf32>
    %9 = vector.shape_cast %8 : vector<1x32x32xf32> to vector<32x32xf32>
    %c0_9 = arith.constant 0 : index
    %c0_10 = arith.constant 0 : index
    %c0_11 = arith.constant 0 : index
    %10 = vector.load %arg5[%c0_9, %c0_10, %c0_11] : memref<2x1x32xf32, #tpu.memory_space<vmem>>, vector<1x1x32xf32>
    %11 = vector.shape_cast %10 : vector<1x1x32xf32> to vector<1x32xf32>
    %cst_12 = arith.constant dense<0.000000e+00> : vector<8x32xf32>
    %12 = tpu.matmul %7, %9, %cst_12 {dimension_numbers = #tpu.dot_dimension_numbers<[1], [0], [0], [1], [0, 0, 1, 1], [], []>} : vector<8x32xf32>, vector<32x32xf32>, vector<8x32xf32> -> vector<8x32xf32>
    %13 = vector.broadcast %11 : vector<1x32xf32> to vector<8x32xf32>
    %14 = arith.addf %12, %13 : vector<8x32xf32>
    %cst_13 = arith.constant 0.000000e+00 : f32
    %15 = vector.broadcast %cst_13 : f32 to vector<8x32xf32>
    %16 = arith.maximumf %14, %15 : vector<8x32xf32>
    %c1 = arith.constant 1 : index
    %c0_14 = arith.constant 0 : index
    %c0_15 = arith.constant 0 : index
    %17 = vector.load %arg4[%c1, %c0_14, %c0_15] : memref<2x32x32xf32, #tpu.memory_space<vmem>>, vector<1x32x32xf32>
    %18 = vector.shape_cast %17 : vector<1x32x32xf32> to vector<32x32xf32>
    %c1_16 = arith.constant 1 : index
    %c0_17 = arith.constant 0 : index
    %c0_18 = arith.constant 0 : index
    %19 = vector.load %arg5[%c1_16, %c0_17, %c0_18] : memref<2x1x32xf32, #tpu.memory_space<vmem>>, vector<1x1x32xf32>
    %20 = vector.shape_cast %19 : vector<1x1x32xf32> to vector<1x32xf32>
    %cst_19 = arith.constant dense<0.000000e+00> : vector<8x32xf32>
    %21 = tpu.matmul %16, %18, %cst_19 {dimension_numbers = #tpu.dot_dimension_numbers<[1], [0], [0], [1], [0, 0, 1, 1], [], []>} : vector<8x32xf32>, vector<32x32xf32>, vector<8x32xf32> -> vector<8x32xf32>
    %22 = vector.broadcast %20 : vector<1x32xf32> to vector<8x32xf32>
    %23 = arith.addf %21, %22 : vector<8x32xf32>
    %cst_20 = arith.constant 0.000000e+00 : f32
    %24 = vector.broadcast %cst_20 : f32 to vector<8x32xf32>
    %25 = arith.maximumf %23, %24 : vector<8x32xf32>
    %c0_21 = arith.constant 0 : index
    %c0_22 = arith.constant 0 : index
    %26 = vector.load %arg6[%c0_21, %c0_22] : memref<32x128xf32, #tpu.memory_space<vmem>>, vector<32x128xf32>
    %cst_23 = arith.constant dense<0.000000e+00> : vector<8x128xf32>
    %27 = tpu.matmul %25, %26, %cst_23 {dimension_numbers = #tpu.dot_dimension_numbers<[1], [0], [0], [1], [0, 0, 1, 1], [], []>} : vector<8x32xf32>, vector<32x128xf32>, vector<8x128xf32> -> vector<8x128xf32>
    %c0_24 = arith.constant 0 : index
    %c0_25 = arith.constant 0 : index
    %28 = vector.load %arg7[%c0_24, %c0_25] : memref<1x128xf32, #tpu.memory_space<vmem>>, vector<1x128xf32>
    %29 = vector.broadcast %28 : vector<1x128xf32> to vector<8x128xf32>
    %30 = arith.addf %27, %29 : vector<8x128xf32>
    %31 = tpu.iota {dimensions = array<i32: 1>} : vector<8x128xi32>
    %c0_i32 = arith.constant 0 : i32
    %32 = vector.broadcast %c0_i32 : i32 to vector<8x128xi32>
    %33 = arith.cmpi eq, %31, %32 : vector<8x128xi32>
    %34 = math.tanh %30 : vector<8x128xf32>
    %35 = arith.select %33, %30, %34 : vector<8x128xi1>, vector<8x128xf32>
    %c0_26 = arith.constant 0 : index
    %c0_27 = arith.constant 0 : index
    %36 = vector.load %arg8[%c0_26, %c0_27] : memref<8x128xf32, #tpu.memory_space<vmem>>, vector<8x128xf32>
    tpu.vector_store %arg8[%c0_26, %c0_27], %35 {strides = array<i32>} : memref<8x128xf32, #tpu.memory_space<vmem>>, vector<8x128xf32>,
    return
  }
  func.func @transform_0(%arg0: i32) -> (i32, i32) {
    %c0_i32 = arith.constant 0 : i32
    %c0_i32_0 = arith.constant 0 : i32
    return %arg0, %c0_i32 : i32, i32
  }
  func.func @transform_1(%arg0: i32) -> (i32, i32) {
    %c0_i32 = arith.constant 0 : i32
    %c0_i32_0 = arith.constant 0 : i32
    %c0_i32_1 = arith.constant 0 : i32
    return %c0_i32, %c0_i32_0 : i32, i32
  }
  func.func @transform_2(%arg0: i32) -> (i32, i32) {
    %c0_i32 = arith.constant 0 : i32
    %c0_i32_0 = arith.constant 0 : i32
    %c0_i32_1 = arith.constant 0 : i32
    return %c0_i32, %c0_i32_0 : i32, i32
  }
  func.func @transform_3(%arg0: i32) -> (i32, i32, i32) {
    %c0_i32 = arith.constant 0 : i32
    %c0_i32_0 = arith.constant 0 : i32
    %c0_i32_1 = arith.constant 0 : i32
    %c0_i32_2 = arith.constant 0 : i32
    return %c0_i32, %c0_i32_0, %c0_i32_1 : i32, i32, i32
  }
  func.func @transform_4(%arg0: i32) -> (i32, i32, i32) {
    %c0_i32 = arith.constant 0 : i32
    %c0_i32_0 = arith.constant 0 : i32
    %c0_i32_1 = arith.constant 0 : i32
    %c0_i32_2 = arith.constant 0 : i32
    return %c0_i32, %c0_i32_0, %c0_i32_1 : i32, i32, i32
  }
  func.func @transform_5(%arg0: i32) -> (i32, i32) {
    %c0_i32 = arith.constant 0 : i32
    %c0_i32_0 = arith.constant 0 : i32
    %c0_i32_1 = arith.constant 0 : i32
    return %c0_i32, %c0_i32_0 : i32, i32
  }
  func.func @transform_6(%arg0: i32) -> (i32, i32) {
    %c0_i32 = arith.constant 0 : i32
    %c0_i32_0 = arith.constant 0 : i32
    %c0_i32_1 = arith.constant 0 : i32
    return %c0_i32, %c0_i32_0 : i32, i32
  }
  func.func @transform_7(%arg0: i32) -> (i32, i32) {
    %c0_i32 = arith.constant 0 : i32
    %c0_i32_0 = arith.constant 0 : i32
    return %arg0, %c0_i32 : i32, i32
  }
}

</mosaic_0001>

<bundles_post_ra>
// kernel: tpu_custom_call.1
= control target key start
LH: loop header
LB: loop body
LE: loop exit
PB: predicated region body
PF: predicated region fallthrough
CT: control target
= control target key end

     0   :  { %12 = vsyncpa [#allocation3], 0  ;;  %s723_s0 = inlined_call_operand.hbm [shape: f32[8,16], index: 0, kind: input, shape index: {}]   ;;  %s724_s1 = inlined_call_operand.hbm [shape: f32[16,32], index: 1, kind: input, shape index: {}]   ;;  %s725_s2 = inlined_call_operand.vmem [shape: f32[1,32], index: 2, kind: input, shape index: {}]   ;;  %s726_s3 = inlined_call_operand.hbm [shape: f32[2,32,32], index: 3, kind: input, shape index: {}]   ;;  %s727_s4 = inlined_call_operand.vmem [shape: f32[2,1,32], index: 4, kind: input, shape index: {}]   ;;  %s728_s5 = inlined_call_operand.hbm [shape: f32[32,128], index: 5, kind: input, shape index: {}]   ;;  %s729_s6 = inlined_call_operand.vmem [shape: f32[1,128], index: 6, kind: input, shape index: {}]   ;;  %s730_s7 = inlined_call_operand.hbm [shape: f32[8,128], index: 7, kind: output, shape index: {}]  }
   0x1   :  { %13 = vsyncpa [#allocation6], 0 }
   0x2   :  { %14 = vsyncpa [#allocation9], 0 }
   0x3   :  { %15 = vsyncpa [#allocation4], 0  ;;  %s631_s24 = smov [#allocation5]  }
   0x4   :  { %s31_s25 = sshll.u32 %s631_s24, 4  ;;  %s32_s25 = int_to_ptr.vmem [resolvable:$true] %s31_s25 }
   0x5   :  { %s531_s26 = scalar_lea.vmem %s32_s25, 256  ;;  %p536_p1 = scmp.lt.s32.totalorder %s32_s25, %s32_s25 }
   0x6   :  { %p532_p0 = scmp.ne.s32.totalorder %s32_s25, %s531_s26  ;;  %p537_p2 = scmp.lt.s32.totalorder %s531_s26, %s531_s26 }
   0x8   :  { %p538_p3 = por %p537_p2, %p536_p1 }
   0xa   :  { %p539_p4 = pnand %p538_p3, %p532_p0 }
   0xc   :  { %542 = shalt.err (!%p539_p4)
}
   0xd   :  { %s632_s27 = smov 128   ;;  %s633_s28 = smov 8  }
   0xe   :  { %37 = dma.hbm_to_vmem [thread:$0]  %s724_s1, 256, %s32_s25, [#allocation6], %s632_s27, %s632_s27, %s633_s28  }
   0xf   :  { %s634_s8 = smov [#allocation2]   ;;  %s635_s10 = smov [#allocation7]  }
  0x10   :  { %s22_s9 = sshll.u32 %s634_s8, 4  ;;  %s45_s11 = sshll.u32 %s635_s10, 4  ;;  %s23_s9 = int_to_ptr.vmem [resolvable:$true] %s22_s9  ;;  %s46_s11 = int_to_ptr.vmem [resolvable:$true] %s45_s11 }
  0x11   :  { %s551_s12 = scalar_lea.vmem %s23_s9, 128  ;;  %p556_p6 = scmp.lt.s32.totalorder %s23_s9, %s23_s9 }
  0x12   :  { %p552_p5 = scmp.ne.s32.totalorder %s23_s9, %s551_s12  ;;  %p557_p7 = scmp.lt.s32.totalorder %s551_s12, %s551_s12 }
  0x14   :  { %p558_p8 = por %p557_p7, %p556_p6 }
  0x16   :  { %p559_p9 = pnand %p558_p8, %p552_p5 }
  0x18   :  { %562 = shalt.err (!%p559_p9)
}
  0x19   :  { %25 = dma.hbm_to_vmem [thread:$0]  %s723_s0, 128, %s23_s9, [#allocation3]  }
  0x1a   :  { %s571_s15 = scalar_lea.vmem %s46_s11, 1024  ;;  %p576_p11 = scmp.lt.s32.totalorder %s46_s11, %s46_s11 }
  0x1b   :  { %p572_p10 = scmp.ne.s32.totalorder %s46_s11, %s571_s15  ;;  %p577_p12 = scmp.lt.s32.totalorder %s571_s15, %s571_s15 }
  0x1d   :  { %p578_p13 = por %p577_p12, %p576_p11 }
  0x1f   :  { %p579_p0 = pnand %p578_p13, %p572_p10 }
  0x21   :  { %582 = shalt.err (!%p579_p0)
}
  0x22   :  { %51 = dma.hbm_to_vmem [thread:$0]  %s726_s3, 1024, %s46_s11, [#allocation6], %s632_s27, %s632_s27, %s633_s28  }
  0x23   :  { %s636_s17 = smov [#allocation8]  }
  0x24   :  { %s59_s18 = sshll.u32 %s636_s17, 4  ;;  %s60_s18 = int_to_ptr.vmem [resolvable:$true] %s59_s18 }
  0x25   :  { %s591_s19 = scalar_lea.vmem %s60_s18, 512  ;;  %p596_p2 = scmp.lt.s32.totalorder %s60_s18, %s60_s18 }
  0x26   :  { %p592_p1 = scmp.ne.s32.totalorder %s60_s18, %s591_s19  ;;  %p597_p3 = scmp.lt.s32.totalorder %s591_s19, %s591_s19 }
  0x28   :  { %p598_p4 = por %p597_p3, %p596_p2 }
  0x2a   :  { %p599_p5 = pnand %p598_p4, %p592_p1 }
  0x2c   :  { %602 = shalt.err (!%p599_p5)
}
  0x2d   :  { %65 = dma.hbm_to_vmem [thread:$0]  %s728_s5, 512, %s60_s18, [#allocation9], %s632_s27, %s632_s27, %s633_s28  }
  0x2e   :  { %623 = dma.done.wait [#allocation3], 128  }
  0x2f   :  { %624 = vsyncadd [#allocation3], 4294967168 }
  0x30   :  { %625 = dma.done.wait [#allocation6], 1280  }
  0x31   :  { %626 = vsyncadd [#allocation6], 4294966016 }
  0x32   :  { %627 = dma.done.wait [#allocation9], 512  }
  0x33   :  { %628 = vsyncadd [#allocation9], 4294966784  ;;  %v637_v0 = vmov 0.0   ;;  %vm638_vm0 = vmmov 0   ;;  %v82_v1 = vld [vmem:[#allocation5 + $0x8] sm:$0xff]  ;;  %v81_v2 = vld [vmem:[#allocation5] sm:$0xff]  ;;  %v422_v35 = vlaneseq }
  0x34   :  { %472 = vmatprep.subr.mxu0 %v637_v0  ;;  %476 = vmatprep.mubr.msk.f32.mxu0 %vm638_vm0, %v637_v0  ;;  %v80_v3 = vld [vmem:[#allocation2] sm:$0xff]  ;;  %vm90_vm1 = vcmask 130048   ;;  %v168_v4 = vld [vmem:[#allocation7 + $0x18] sm:$0xff]  ;;  %v167_v5 = vld [vmem:[#allocation7 + $0x10] sm:$0xff]  ;;  %vm176_vm2 = vcmask 261120   ;;  %s639_s26 = smov [#allocation10]  }
  0x35   :  { %479 = vmatprep.subr.mxu1 %v637_v0  ;;  %487 = vmatprep.mubr.msk.f32.mxu1 %vm638_vm0, %v637_v0  ;;  %v166_v6 = vld [vmem:[#allocation7 + $0x8] sm:$0xff]  ;;  %v165_v7 = vld [vmem:[#allocation7] sm:$0xff]  ;;  %v255_v8 = vld [vmem:[#allocation7 + $0x38] sm:$0xff]  ;;  %v423_v36 = vand.u32 127, %v422_v35  ;;  %s434_s27 = sshll.u32 %s639_s26, 4  ;;  %s435_s27 = int_to_ptr.vmem [resolvable:$true] %s434_s27 }
  0x36   :  { %473 = vmatpush3.msra.mxu0 %v82_v1  ;;  %480 = vmatpush3.msra.mxu1 %v168_v4  ;;  %v445_v9 = vld [vmem:[%s725_s2] ss:$0 sm:$0xff]  ;;  %v254_v14 = vld [vmem:[#allocation7 + $0x30] sm:$0xff]  ;;  %v252_v16 = vld [vmem:[#allocation7 + $0x20] sm:$0xff]  ;;  %p608_p7 = scmp.lt.s32.totalorder %s435_s27, %s435_s27 }
  0x37   :  { %474 = vmatprep.subr.mxu0 %v637_v0  ;;  %481 = vmatprep.subr.mxu1 %v637_v0  ;;  %v253_v15 = vld [vmem:[#allocation7 + $0x28] sm:$0xff]  ;;  %v341_v17 = vld [vmem:[#allocation8 + $0x18] sm:$0xff]  ;;  %v340_v23 = vld [vmem:[#allocation8 + $0x10] sm:$0xff]  ;;  %vm424_vm3 = vcmp.eq.s32.totalorder %v423_v36, 0 }
  0x38   :  { %475 = vmatpush3.msra.mxu0 %v81_v2  ;;  %482 = vmatpush3.msra.mxu1 %v167_v5  ;;  %v447_v18 = vld [vmem:[%s727_s4] ss:$0 sm:$0xff]  ;;  %v338_v25 = vld [vmem:[#allocation8] sm:$0xff]  ;;  %v450_v26 = vld [vmem:[%s727_s4 + $0x1] ss:$0 sm:$0xff]  ;;  %s603_s4 = scalar_lea.vmem %s435_s27, 128 }
  0x39   :  { %477 = vmatmul.mubr.msk.f32.vlgmr.msra.gmra.mxu0 %vm90_vm1, %v80_v3  ;;  %490 = vmatprep.subr.mxu0 %v637_v0  ;;  %v339_v24 = vld [vmem:[#allocation8 + $0x8] sm:$0xff]  ;;  %p604_p6 = scmp.ne.s32.totalorder %s435_s27, %s603_s4  ;;  %p609_p8 = scmp.lt.s32.totalorder %s603_s4, %s603_s4 }
  0x3a   :  { %498 = vmatprep.mubr.msk.f32.mxu0 %vm638_vm0, %v637_v0  ;;  %483 = vmatprep.subr.mxu1 %v637_v0  ;;  %v452_v31 = vld [vmem:[%s729_s6] ss:$0 sm:$0xff] }
  0x3b   :  { %484 = vmatpush3.msra.mxu1 %v166_v6  ;;  %491 = vmatpush3.msra.mxu0 %v255_v8  ;;  %p610_p9 = por %p609_p8, %p608_p7 }
  0x3c   :  { %485 = vmatprep.subr.mxu1 %v637_v0  ;;  %492 = vmatprep.subr.mxu0 %v637_v0 }
  0x3d   :  { %486 = vmatpush3.msra.mxu1 %v165_v7  ;;  %493 = vmatpush3.msra.mxu0 %v254_v14  ;;  %p611_p10 = pnand %p610_p9, %p604_p6 }
  0x3e   :  { %501 = vmatprep.subr.mxu1 %v637_v0  ;;  %494 = vmatprep.subr.mxu0 %v637_v0 }
  0x3f   :  { %495 = vmatpush3.msra.mxu0 %v253_v15 }
  0x40   :  { %496 = vmatprep.subr.mxu0 %v637_v0 }
  0x41   :  { %497 = vmatpush3.msra.mxu0 %v252_v16 }
  0xf9   :  { %v160_v10 = vpop.f32.mrf.mxu0 }
  0xfa   :  { %v161_v11 = vadd.f32 %v445_v9, %v160_v10 }
  0xfb   :  { %v478_v12 = vpop.f32.mrf.mxu0 }
  0xfc   :  { %v164_v13 = vmax.f32 %v161_v11, 0.0 }
  0xfe   :  { %488 = vmatmul.mubr.msk.f32.vlgmr.msra.gmra.mxu1 %vm176_vm2, %v164_v13 }
  0xff   :  { %509 = vmatprep.mubr.msk.f32.mxu1 %vm638_vm0, %v637_v0  ;;  %502 = vmatpush3.msra.mxu1 %v341_v17 }
 0x100   :  { %503 = vmatprep.subr.mxu1 %v637_v0 }
 0x101   :  { %504 = vmatpush3.msra.mxu1 %v340_v23 }
 0x102   :  { %505 = vmatprep.subr.mxu1 %v637_v0 }
 0x103   :  { %506 = vmatpush3.msra.mxu1 %v339_v24 }
 0x104   :  { %507 = vmatprep.subr.mxu1 %v637_v0 }
 0x105   :  { %508 = vmatpush3.msra.mxu1 %v338_v25 }
 0x1be   :  { %v246_v19 = vpop.f32.mrf.mxu1 }
 0x1bf   :  { %v247_v20 = vadd.f32 %v447_v18, %v246_v19 }
 0x1c0   :  { %v489_v21 = vpop.f32.mrf.mxu1 }
 0x1c1   :  { %v250_v22 = vmax.f32 %v247_v20, 0.0 }
 0x1c3   :  { %499 = vmatmul.mubr.msk.f32.vlgmr.msra.gmra.mxu0 %vm176_vm2, %v250_v22 }
 0x283   :  { %v333_v27 = vpop.f32.mrf.mxu0 }
 0x284   :  { %v334_v28 = vadd.f32 %v450_v26, %v333_v27 }
 0x285   :  { %v500_v29 = vpop.f32.mrf.mxu0 }
 0x286   :  { %v337_v30 = vmax.f32 %v334_v28, 0.0 }
 0x288   :  { %510 = vmatmul.mubr.msk.f32.vlgmr.msra.gmra.mxu1 %vm176_vm2, %v337_v30 }
 0x348   :  { %v418_v32 = vpop.f32.mrf.mxu1 }
 0x349   :  { %v419_v33 = vadd.f32 %v452_v31, %v418_v32 }
 0x34a   :  { %v511_v34 = vpop.f32.mrf.mxu1 }
 0x34b   :  { %521 = vtanh.f32 %v419_v33 }
 0x358   :  { %v522_v37 = vpop.eup %521 }
 0x359   :  { %v426_v38 = vsel %vm424_vm3, %v419_v33, %v522_v37 }
 0x35a   :  { %427 = vst [vmem:[#allocation10] sm:$0xff] %v426_v38 }
 0x35b   :  { %614 = shalt.err (!%p611_p10)
}
 0x35c   :  { %437 = dma.vmem_to_hbm [thread:$0]  %s435_s27, 128, %s730_s7, [#allocation4]  }
 0x35d   :  { %629 = dma.done.wait [#allocation4], 128  }
 0x35e   :  { %630 = vsyncadd [#allocation4], 4294967168 }
 0x35f   :  { %441 = vsyncpa [#allocation3], 1 }
 0x360   :  { %442 = vsyncpa [#allocation6], 1 }
 0x361   :  { %443 = vsyncpa [#allocation9], 1 }
 0x362   :  { %444 = vsyncpa [#allocation4], 1 }

// kernel: tpu_custom_call.1
= control target key start
LH: loop header
LB: loop body
LE: loop exit
PB: predicated region body
PF: predicated region fallthrough
CT: control target
= control target key end

     0   :  { %12 = vsyncpa [#allocation3], 0  ;;  %s723_s0 = inlined_call_operand.hbm [shape: f32[8,16], index: 0, kind: input, shape index: {}]   ;;  %s724_s1 = inlined_call_operand.hbm [shape: f32[16,32], index: 1, kind: input, shape index: {}]   ;;  %s725_s2 = inlined_call_operand.vmem [shape: f32[1,32], index: 2, kind: input, shape index: {}]   ;;  %s726_s3 = inlined_call_operand.hbm [shape: f32[2,32,32], index: 3, kind: input, shape index: {}]   ;;  %s727_s4 = inlined_call_operand.vmem [shape: f32[2,1,32], index: 4, kind: input, shape index: {}]   ;;  %s728_s5 = inlined_call_operand.hbm [shape: f32[32,128], index: 5, kind: input, shape index: {}]   ;;  %s729_s6 = inlined_call_operand.vmem [shape: f32[1,128], index: 6, kind: input, shape index: {}]   ;;  %s730_s7 = inlined_call_operand.hbm [shape: f32[8,128], index: 7, kind: output, shape index: {}]  }
   0x1   :  { %13 = vsyncpa [#allocation6], 0 }
   0x2   :  { %14 = vsyncpa [#allocation9], 0 }
   0x3   :  { %15 = vsyncpa [#allocation4], 0  ;;  %s631_s24 = smov [#allocation5]  }
   0x4   :  { %s31_s25 = sshll.u32 %s631_s24, 4  ;;  %s32_s25 = int_to_ptr.vmem [resolvable:$true] %s31_s25 }
   0x5   :  { %s531_s26 = scalar_lea.vmem %s32_s25, 256  ;;  %p536_p1 = scmp.lt.s32.totalorder %s32_s25, %s32_s25 }
   0x6   :  { %p532_p0 = scmp.ne.s32.totalorder %s32_s25, %s531_s26  ;;  %p537_p2 = scmp.lt.s32.totalorder %s531_s26, %s531_s26 }
   0x8   :  { %p538_p3 = por %p537_p2, %p536_p1 }
   0xa   :  { %p539_p4 = pnand %p538_p3, %p532_p0 }
   0xc   :  { %542 = shalt.err (!%p539_p4)
}
   0xd   :  { %s632_s27 = smov 128   ;;  %s633_s28 = smov 8  }
   0xe   :  { %37 = dma.hbm_to_vmem [thread:$0]  %s724_s1, 256, %s32_s25, [#allocation6], %s632_s27, %s632_s27, %s633_s28  }
   0xf   :  { %s634_s8 = smov [#allocation2]   ;;  %s635_s10 = smov [#allocation7]  }
  0x10   :  { %s22_s9 = sshll.u32 %s634_s8, 4  ;;  %s45_s11 = sshll.u32 %s635_s10, 4  ;;  %s23_s9 = int_to_ptr.vmem [resolvable:$true] %s22_s9  ;;  %s46_s11 = int_to_ptr.vmem [resolvable:$true] %s45_s11 }
  0x11   :  { %s551_s12 = scalar_lea.vmem %s23_s9, 128  ;;  %p556_p6 = scmp.lt.s32.totalorder %s23_s9, %s23_s9 }
  0x12   :  { %p552_p5 = scmp.ne.s32.totalorder %s23_s9, %s551_s12  ;;  %p557_p7 = scmp.lt.s32.totalorder %s551_s12, %s551_s12 }
  0x14   :  { %p558_p8 = por %p557_p7, %p556_p6 }
  0x16   :  { %p559_p9 = pnand %p558_p8, %p552_p5 }
  0x18   :  { %562 = shalt.err (!%p559_p9)
}
  0x19   :  { %25 = dma.hbm_to_vmem [thread:$0]  %s723_s0, 128, %s23_s9, [#allocation3]  }
  0x1a   :  { %s571_s15 = scalar_lea.vmem %s46_s11, 1024  ;;  %p576_p11 = scmp.lt.s32.totalorder %s46_s11, %s46_s11 }
  0x1b   :  { %p572_p10 = scmp.ne.s32.totalorder %s46_s11, %s571_s15  ;;  %p577_p12 = scmp.lt.s32.totalorder %s571_s15, %s571_s15 }
  0x1d   :  { %p578_p13 = por %p577_p12, %p576_p11 }
  0x1f   :  { %p579_p0 = pnand %p578_p13, %p572_p10 }
  0x21   :  { %582 = shalt.err (!%p579_p0)
}
  0x22   :  { %51 = dma.hbm_to_vmem [thread:$0]  %s726_s3, 1024, %s46_s11, [#allocation6], %s632_s27, %s632_s27, %s633_s28  }
  0x23   :  { %s636_s17 = smov [#allocation8]  }
  0x24   :  { %s59_s18 = sshll.u32 %s636_s17, 4  ;;  %s60_s18 = int_to_ptr.vmem [resolvable:$true] %s59_s18 }
  0x25   :  { %s591_s19 = scalar_lea.vmem %s60_s18, 512  ;;  %p596_p2 = scmp.lt.s32.totalorder %s60_s18, %s60_s18 }
  0x26   :  { %p592_p1 = scmp.ne.s32.totalorder %s60_s18, %s591_s19  ;;  %p597_p3 = scmp.lt.s32.totalorder %s591_s19, %s591_s19 }
  0x28   :  { %p598_p4 = por %p597_p3, %p596_p2 }
  0x2a   :  { %p599_p5 = pnand %p598_p4, %p592_p1 }
  0x2c   :  { %602 = shalt.err (!%p599_p5)
}
  0x2d   :  { %65 = dma.hbm_to_vmem [thread:$0]  %s728_s5, 512, %s60_s18, [#allocation9], %s632_s27, %s632_s27, %s633_s28  }
  0x2e   :  { %623 = dma.done.wait [#allocation3], 128  }
  0x2f   :  { %624 = vsyncadd [#allocation3], 4294967168 }
  0x30   :  { %625 = dma.done.wait [#allocation6], 1280  }
  0x31   :  { %626 = vsyncadd [#allocation6], 4294966016 }
  0x32   :  { %627 = dma.done.wait [#allocation9], 512  }
  0x33   :  { %628 = vsyncadd [#allocation9], 4294966784  ;;  %v637_v0 = vmov 0.0   ;;  %vm638_vm0 = vmmov 0   ;;  %v82_v1 = vld [vmem:[#allocation5 + $0x8] sm:$0xff]  ;;  %v81_v2 = vld [vmem:[#allocation5] sm:$0xff]  ;;  %v422_v35 = vlaneseq }
  0x34   :  { %472 = vmatprep.subr.mxu0 %v637_v0  ;;  %476 = vmatprep.mubr.msk.f32.mxu0 %vm638_vm0, %v637_v0  ;;  %v80_v3 = vld [vmem:[#allocation2] sm:$0xff]  ;;  %vm90_vm1 = vcmask 130048   ;;  %v168_v4 = vld [vmem:[#allocation7 + $0x18] sm:$0xff]  ;;  %v167_v5 = vld [vmem:[#allocation7 + $0x10] sm:$0xff]  ;;  %vm176_vm2 = vcmask 261120   ;;  %s639_s26 = smov [#allocation10]  }
  0x35   :  { %479 = vmatprep.subr.mxu1 %v637_v0  ;;  %487 = vmatprep.mubr.msk.f32.mxu1 %vm638_vm0, %v637_v0  ;;  %v166_v6 = vld [vmem:[#allocation7 + $0x8] sm:$0xff]  ;;  %v165_v7 = vld [vmem:[#allocation7] sm:$0xff]  ;;  %v255_v8 = vld [vmem:[#allocation7 + $0x38] sm:$0xff]  ;;  %v423_v36 = vand.u32 127, %v422_v35  ;;  %s434_s27 = sshll.u32 %s639_s26, 4  ;;  %s435_s27 = int_to_ptr.vmem [resolvable:$true] %s434_s27 }
  0x36   :  { %473 = vmatpush3.msra.mxu0 %v82_v1  ;;  %480 = vmatpush3.msra.mxu1 %v168_v4  ;;  %v445_v9 = vld [vmem:[%s725_s2] ss:$0 sm:$0xff]  ;;  %v254_v14 = vld [vmem:[#allocation7 + $0x30] sm:$0xff]  ;;  %v252_v16 = vld [vmem:[#allocation7 + $0x20] sm:$0xff]  ;;  %p608_p7 = scmp.lt.s32.totalorder %s435_s27, %s435_s27 }
  0x37   :  { %474 = vmatprep.subr.mxu0 %v637_v0  ;;  %481 = vmatprep.subr.mxu1 %v637_v0  ;;  %v253_v15 = vld [vmem:[#allocation7 + $0x28] sm:$0xff]  ;;  %v341_v17 = vld [vmem:[#allocation8 + $0x18] sm:$0xff]  ;;  %v340_v23 = vld [vmem:[#allocation8 + $0x10] sm:$0xff]  ;;  %vm424_vm3 = vcmp.eq.s32.totalorder %v423_v36, 0 }
  0x38   :  { %475 = vmatpush3.msra.mxu0 %v81_v2  ;;  %482 = vmatpush3.msra.mxu1 %v167_v5  ;;  %v447_v18 = vld [vmem:[%s727_s4] ss:$0 sm:$0xff]  ;;  %v338_v25 = vld [vmem:[#allocation8] sm:$0xff]  ;;  %v450_v26 = vld [vmem:[%s727_s4 + $0x1] ss:$0 sm:$0xff]  ;;  %s603_s4 = scalar_lea.vmem %s435_s27, 128 }
  0x39   :  { %477 = vmatmul.mubr.msk.f32.vlgmr.msra.gmra.mxu0 %vm90_vm1, %v80_v3  ;;  %490 = vmatprep.subr.mxu0 %v637_v0  ;;  %v339_v24 = vld [vmem:[#allocation8 + $0x8] sm:$0xff]  ;;  %p604_p6 = scmp.ne.s32.totalorder %s435_s27, %s603_s4  ;;  %p609_p8 = scmp.lt.s32.totalorder %s603_s4, %s603_s4 }
  0x3a   :  { %498 = vmatprep.mubr.msk.f32.mxu0 %vm638_vm0, %v637_v0  ;;  %483 = vmatprep.subr.mxu1 %v637_v0  ;;  %v452_v31 = vld [vmem:[%s729_s6] ss:$0 sm:$0xff] }
  0x3b   :  { %484 = vmatpush3.msra.mxu1 %v166_v6  ;;  %491 = vmatpush3.msra.mxu0 %v255_v8  ;;  %p610_p9 = por %p609_p8, %p608_p7 }
  0x3c   :  { %485 = vmatprep.subr.mxu1 %v637_v0  ;;  %492 = vmatprep.subr.mxu0 %v637_v0 }
  0x3d   :  { %486 = vmatpush3.msra.mxu1 %v165_v7  ;;  %493 = vmatpush3.msra.mxu0 %v254_v14  ;;  %p611_p10 = pnand %p610_p9, %p604_p6 }
  0x3e   :  { %501 = vmatprep.subr.mxu1 %v637_v0  ;;  %494 = vmatprep.subr.mxu0 %v637_v0 }
  0x3f   :  { %495 = vmatpush3.msra.mxu0 %v253_v15 }
  0x40   :  { %496 = vmatprep.subr.mxu0 %v637_v0 }
  0x41   :  { %497 = vmatpush3.msra.mxu0 %v252_v16 }
  0xf9   :  { %v160_v10 = vpop.f32.mrf.mxu0 }
  0xfa   :  { %v161_v11 = vadd.f32 %v445_v9, %v160_v10 }
  0xfb   :  { %v478_v12 = vpop.f32.mrf.mxu0 }
  0xfc   :  { %v164_v13 = vmax.f32 %v161_v11, 0.0 }
  0xfe   :  { %488 = vmatmul.mubr.msk.f32.vlgmr.msra.gmra.mxu1 %vm176_vm2, %v164_v13 }
  0xff   :  { %509 = vmatprep.mubr.msk.f32.mxu1 %vm638_vm0, %v637_v0  ;;  %502 = vmatpush3.msra.mxu1 %v341_v17 }
 0x100   :  { %503 = vmatprep.subr.mxu1 %v637_v0 }
 0x101   :  { %504 = vmatpush3.msra.mxu1 %v340_v23 }
 0x102   :  { %505 = vmatprep.subr.mxu1 %v637_v0 }
 0x103   :  { %506 = vmatpush3.msra.mxu1 %v339_v24 }
 0x104   :  { %507 = vmatprep.subr.mxu1 %v637_v0 }
 0x105   :  { %508 = vmatpush3.msra.mxu1 %v338_v25 }
 0x1be   :  { %v246_v19 = vpop.f32.mrf.mxu1 }
 0x1bf   :  { %v247_v20 = vadd.f32 %v447_v18, %v246_v19 }
 0x1c0   :  { %v489_v21 = vpop.f32.mrf.mxu1 }
 0x1c1   :  { %v250_v22 = vmax.f32 %v247_v20, 0.0 }
 0x1c3   :  { %499 = vmatmul.mubr.msk.f32.vlgmr.msra.gmra.mxu0 %vm176_vm2, %v250_v22 }
 0x283   :  { %v333_v27 = vpop.f32.mrf.mxu0 }
 0x284   :  { %v334_v28 = vadd.f32 %v450_v26, %v333_v27 }
 0x285   :  { %v500_v29 = vpop.f32.mrf.mxu0 }
 0x286   :  { %v337_v30 = vmax.f32 %v334_v28, 0.0 }
 0x288   :  { %510 = vmatmul.mubr.msk.f32.vlgmr.msra.gmra.mxu1 %vm176_vm2, %v337_v30 }
 0x348   :  { %v418_v32 = vpop.f32.mrf.mxu1 }
 0x349   :  { %v419_v33 = vadd.f32 %v452_v31, %v418_v32 }
 0x34a   :  { %v511_v34 = vpop.f32.mrf.mxu1 }
 0x34b   :  { %521 = vtanh.f32 %v419_v33 }
 0x358   :  { %v522_v37 = vpop.eup %521 }
 0x359   :  { %v426_v38 = vsel %vm424_vm3, %v419_v33, %v522_v37 }
 0x35a   :  { %427 = vst [vmem:[#allocation10] sm:$0xff] %v426_v38 }
 0x35b   :  { %614 = shalt.err (!%p611_p10)
}
 0x35c   :  { %437 = dma.vmem_to_hbm [thread:$0]  %s435_s27, 128, %s730_s7, [#allocation4]  }
 0x35d   :  { %629 = dma.done.wait [#allocation4], 128  }
 0x35e   :  { %630 = vsyncadd [#allocation4], 4294967168 }
 0x35f   :  { %441 = vsyncpa [#allocation3], 1 }
 0x360   :  { %442 = vsyncpa [#allocation6], 1 }
 0x361   :  { %443 = vsyncpa [#allocation9], 1 }
 0x362   :  { %444 = vsyncpa [#allocation4], 1 }

</bundles_post_ra>
